<compile_context>
chip_gen: v7x
topology: tpu7x:2x2x1
jax: 0.10.0
libtpu: 0.0.40
codegen_flags: <defaults>
</compile_context>

<pallas_src>
import functools

import jax
import jax.numpy as jnp
from jax.experimental import pallas as pl
from jax.experimental.pallas import tpu as pltpu  # noqa: F401  (TPU Pallas backend)


# ----------------------------------------------------------------------------- kernel


def _adaptive_anchor_kernel(base_ref, pred_ref, out_ref):
    """Single-block kernel (whole level in VMEM).

    base_ref : VMEM (2, N, 1)   base_anchors * stride, tiled per (batch, anchor) row
    pred_ref : VMEM (2, N, HW)  anchor logits, (w,h) pair leading, spatial lane-dense
    out_ref  : VMEM (2, N, HW)  softmax(pred, axis=0) * base
    """
    p0 = pred_ref[0]                      # (N, HW) width logits
    p1 = pred_ref[1]                      # (N, HW) height logits
    # 2-way softmax == sigmoid of the logit difference (stable; one exp, one divide)
    sm0 = 1.0 / (1.0 + jnp.exp(p1 - p0))
    sm1 = 1.0 - sm0
    out_ref[0] = sm0 * base_ref[0]        # (N, 1) broadcasts along the lane axis
    out_ref[1] = sm1 * base_ref[1]


# ----------------------------------------------------------------------------- wrappers


def adaptive_anchors_softmax(anchor_pred, base_anchors_level, stride, num_anchors):
    """anchor_pred: (bs, num_anchors*2, h, w) NCHW.  Returns (bs, na, h, w, 2)."""
    bs, c, h, w = anchor_pred.shape
    assert c == num_anchors * 2
    hw = h * w
    n = bs * num_anchors

    # (bs, na*2, h, w) -> (bs, na, 2, hw) -> (2, bs*na, hw): lane-dense last axis.
    pred = anchor_pred.reshape(bs, num_anchors, 2, hw)
    pred = jnp.transpose(pred, (2, 0, 1, 3)).reshape(2, n, hw)

    # base * stride, tiled per (batch, anchor) row -> (2, bs*na, 1) for lane broadcast.
    base_scaled = base_anchors_level.astype(jnp.float32) * float(stride)      # (na, 2)
    base = jnp.broadcast_to(base_scaled.T[:, None, :], (2, bs, num_anchors))
    base = base.reshape(2, n, 1)

    # Single block, no grid: whole arrays land in VMEM (a few KiB per level).
    out = pl.pallas_call(
        _adaptive_anchor_kernel,
        out_shape=jax.ShapeDtypeStruct((2, n, hw), jnp.float32),
    )(base, pred)

    # (2, bs*na, hw) -> (bs, na, h, w, 2)   (PyTorch .permute(0,1,3,4,2)); XLA glue.
    out = out.reshape(2, bs, num_anchors, h, w)
    return jnp.transpose(out, (1, 2, 3, 4, 0))


def make_coordinate_grid(bs, num_anchors, h, w, stride):
    """Constant coordinate grid in plain JAX (no kernel launch; constant-folds)."""
    x = jnp.arange(w, dtype=jnp.float32) * float(stride)
    y = jnp.arange(h, dtype=jnp.float32) * float(stride)
    xx = jnp.broadcast_to(x[None, :], (h, w))
    yy = jnp.broadcast_to(y[:, None], (h, w))
    grid = jnp.stack((xx, yy), axis=2).reshape(1, 1, h, w, 2)
    # Match torch .expand output shape; XLA keeps this a cheap broadcast under jit.
    return jnp.broadcast_to(grid, (bs, num_anchors, h, w, 2))


@functools.partial(jax.jit, static_argnames=("stride", "num_anchors"))
def _softmax_level_forward(anchor_pred, base_anchors_level, stride, num_anchors):
    bs, _, h, w = anchor_pred.shape
    adaptive = adaptive_anchors_softmax(anchor_pred, base_anchors_level, stride,
                                        num_anchors)
    grid = make_coordinate_grid(bs, num_anchors, h, w, stride)
    return grid, adaptive


class AdaptiveAnchorGenerator:
    def __init__(self, strides, initial_anchors, anchor_softmax=False, num_anchors=3):
        self.strides = strides
        self.initial_anchors = initial_anchors
        self.anchor_softmax = anchor_softmax
        self.num_anchors = num_anchors
        # buffer: (num_levels, num_anchors, 2)
        self.base_anchors = jnp.asarray(initial_anchors, dtype=jnp.float32)
        if anchor_softmax:
            # parameter exists in the PyTorch module but is unused in forward
            self.anchor_offset = jnp.zeros((1, num_anchors, 2), jnp.float32)

    def __call__(self, feature_maps, anchor_preds=None):
        anchor_grids = []
        for i, (feat_map, stride) in enumerate(zip(feature_maps, self.strides)):
            bs, _, h, w = feat_map.shape
            if self.anchor_softmax and anchor_preds is not None:
                grid, adaptive = _softmax_level_forward(
                    anchor_preds[i], self.base_anchors[i],
                    stride=int(stride), num_anchors=self.num_anchors)
            else:
                # trivial parameter-only path (no per-pixel compute): plain JAX glue
                adaptive = (self.base_anchors[i] * float(stride)).reshape(
                    1, self.num_anchors, 1, 1, 2)
                grid = make_coordinate_grid(bs, self.num_anchors, h, w, stride)
            anchor_grids.append((grid, adaptive))
        return anchor_grids


# ----------------------------------------------------------------------------- reference


def _ref_level(anchor_pred, base_anchors_level, stride, num_anchors):
    bs, c, h, w = anchor_pred.shape
    p = anchor_pred.reshape(bs, num_anchors, 2, h, w)
    sm = jax.nn.softmax(p, axis=2)
    base = base_anchors_level.reshape(1, num_anchors, 2, 1, 1)
    ad = jnp.transpose(base * sm * float(stride), (0, 1, 3, 4, 2))
    yy, xx = jnp.meshgrid(
        jnp.arange(h, dtype=jnp.float32), jnp.arange(w, dtype=jnp.float32), indexing="ij"
    )
    g = jnp.stack((xx, yy), 2).reshape(1, 1, h, w, 2) * float(stride)
    g = jnp.broadcast_to(g, (bs, num_anchors, h, w, 2))
    return g, ad


# ----------------------------------------------------------------------------- main


if __name__ == "__main__":
    key = jax.random.PRNGKey(0)
    k_feat0, k_feat1, k_pred0, k_pred1 = jax.random.split(key, 4)

    bs, ch, na = 2, 4, 3
    strides = [8, 16]
    initial_anchors = [
        [[10.0, 13.0], [16.0, 30.0], [33.0, 23.0]],
        [[30.0, 61.0], [62.0, 45.0], [59.0, 119.0]],
    ]

    # NCHW feature maps (only their shapes are used) and anchor predictions
    feature_maps = [
        jax.random.normal(k_feat0, (bs, ch, 16, 16), jnp.float32),
        jax.random.normal(k_feat1, (bs, ch, 8, 8), jnp.float32),
    ]
    anchor_preds = [
        jax.random.normal(k_pred0, (bs, na * 2, 16, 16), jnp.float32),
        jax.random.normal(k_pred1, (bs, na * 2, 8, 8), jnp.float32),
    ]

    gen = AdaptiveAnchorGenerator(strides, initial_anchors, anchor_softmax=True,
                                  num_anchors=na)
    outputs = gen(feature_maps, anchor_preds)
    jax.block_until_ready(outputs)

    # correctness check against a pure-JAX reference of the PyTorch forward
    for i, (grid, adaptive) in enumerate(outputs):
        ref_grid, ref_ad = _ref_level(
            anchor_preds[i], gen.base_anchors[i], strides[i], na
        )
        assert grid.shape == ref_grid.shape and adaptive.shape == ref_ad.shape
        assert jnp.allclose(grid, ref_grid, rtol=1e-5, atol=1e-5)
        assert jnp.allclose(adaptive, ref_ad, rtol=1e-5, atol=1e-5)

    print("KERNEL_OK")
</pallas_src>

<mosaic_0001>
module attributes {stable_mosaic.version = 11 : i64} {
  func.func @_adaptive_anchor_kernel(%arg0: memref<2x6x1xf32, #tpu.memory_space<vmem>>, %arg1: memref<2x6x256xf32, #tpu.memory_space<vmem>>, %arg2: memref<2x6x256xf32, #tpu.memory_space<vmem>>) attributes {dimension_semantics = [], scalar_prefetch = 0 : i64, scratch_operands = 0 : i64, tpu.core_type = #tpu.core_type<tc>} {
    %c0 = arith.constant 0 : index
    %c0_0 = arith.constant 0 : index
    %c0_1 = arith.constant 0 : index
    %0 = vector.load %arg1[%c0, %c0_0, %c0_1] : memref<2x6x256xf32, #tpu.memory_space<vmem>>, vector<1x6x256xf32>
    %1 = vector.shape_cast %0 : vector<1x6x256xf32> to vector<6x256xf32>
    %c1 = arith.constant 1 : index
    %c0_2 = arith.constant 0 : index
    %c0_3 = arith.constant 0 : index
    %2 = vector.load %arg1[%c1, %c0_2, %c0_3] : memref<2x6x256xf32, #tpu.memory_space<vmem>>, vector<1x6x256xf32>
    %3 = vector.shape_cast %2 : vector<1x6x256xf32> to vector<6x256xf32>
    %4 = arith.subf %3, %1 : vector<6x256xf32>
    %5 = math.exp %4 : vector<6x256xf32>
    %cst = arith.constant 1.000000e+00 : f32
    %6 = vector.broadcast %cst : f32 to vector<6x256xf32>
    %7 = arith.addf %6, %5 : vector<6x256xf32>
    %cst_4 = arith.constant 1.000000e+00 : f32
    %8 = vector.broadcast %cst_4 : f32 to vector<6x256xf32>
    %9 = arith.divf %8, %7 : vector<6x256xf32>
    %cst_5 = arith.constant 1.000000e+00 : f32
    %10 = vector.broadcast %cst_5 : f32 to vector<6x256xf32>
    %11 = arith.subf %10, %9 : vector<6x256xf32>
    %c0_6 = arith.constant 0 : index
    %c0_7 = arith.constant 0 : index
    %c0_8 = arith.constant 0 : index
    %12 = vector.load %arg0[%c0_6, %c0_7, %c0_8] : memref<2x6x1xf32, #tpu.memory_space<vmem>>, vector<1x6x1xf32>
    %13 = vector.shape_cast %12 : vector<1x6x1xf32> to vector<6x1xf32>
    %14 = vector.broadcast %13 : vector<6x1xf32> to vector<6x256xf32>
    %15 = arith.mulf %9, %14 : vector<6x256xf32>
    %c0_9 = arith.constant 0 : index
    %c0_10 = arith.constant 0 : index
    %c0_11 = arith.constant 0 : index
    %16 = vector.load %arg2[%c0_9, %c0_10, %c0_11] : memref<2x6x256xf32, #tpu.memory_space<vmem>>, vector<1x6x256xf32>
    %17 = vector.shape_cast %16 : vector<1x6x256xf32> to vector<6x256xf32>
    %18 = vector.shape_cast %15 : vector<6x256xf32> to vector<1x6x256xf32>
    tpu.vector_store %arg2[%c0_9, %c0_10, %c0_11], %18 {strides = array<i32>} : memref<2x6x256xf32, #tpu.memory_space<vmem>>, vector<1x6x256xf32>,
    %c1_12 = arith.constant 1 : index
    %c0_13 = arith.constant 0 : index
    %c0_14 = arith.constant 0 : index
    %19 = vector.load %arg0[%c1_12, %c0_13, %c0_14] : memref<2x6x1xf32, #tpu.memory_space<vmem>>, vector<1x6x1xf32>
    %20 = vector.shape_cast %19 : vector<1x6x1xf32> to vector<6x1xf32>
    %21 = vector.broadcast %20 : vector<6x1xf32> to vector<6x256xf32>
    %22 = arith.mulf %11, %21 : vector<6x256xf32>
    %c1_15 = arith.constant 1 : index
    %c0_16 = arith.constant 0 : index
    %c0_17 = arith.constant 0 : index
    %23 = vector.load %arg2[%c1_15, %c0_16, %c0_17] : memref<2x6x256xf32, #tpu.memory_space<vmem>>, vector<1x6x256xf32>
    %24 = vector.shape_cast %23 : vector<1x6x256xf32> to vector<6x256xf32>
    %25 = vector.shape_cast %22 : vector<6x256xf32> to vector<1x6x256xf32>
    tpu.vector_store %arg2[%c1_15, %c0_16, %c0_17], %25 {strides = array<i32>} : memref<2x6x256xf32, #tpu.memory_space<vmem>>, vector<1x6x256xf32>,
    return
  }
}

</mosaic_0001>

<bundles_post_ra>
// kernel: _softmax_level_forward.1
= control target key start
LH: loop header
LB: loop body
LE: loop exit
PB: predicated region body
PF: predicated region fallthrough
CT: control target
= control target key end

     0   :  { %v71_v0 = vmov 0   ;;  %s117_s0 = inlined_call_operand.vmem [shape: f32[2,6,1], index: 0, kind: input, shape index: {}]   ;;  %s118_s1 = inlined_call_operand.vmem [shape: f32[2,6,256], index: 1, kind: input, shape index: {}]   ;;  %s119_s2 = inlined_call_operand.vmem [shape: f32[2,6,256], index: 2, kind: output, shape index: {}]  }
   0x1   :  { %62 = vset.pattern.permute.xlu0 %v71_v0  ;;  %v30_v1 = vld [vmem:[%s117_s0] sm:$0x3f]  ;;  %v58_v2 = vld [vmem:[%s117_s0 + $0x8] sm:$0x3f]  ;;  %v56_v4 = vld [vmem:[%s118_s1 + $0x10] sm:$0x3f] }
   0x2   :  { %33 = vperm.xlu0 %62, %v30_v1   ;;  %v11_v3 = vld [vmem:[%s118_s1] sm:$0x3f]  ;;  %v12_v5 = vld [vmem:[%s118_s1 + $0x8] sm:$0x3f]  ;;  %v57_v6 = vld [vmem:[%s118_s1 + $0x18] sm:$0x3f] }
   0x3   :  { %v16_v7 = vsub.f32 %v56_v4, %v11_v3  ;;  %v17_v8 = vsub.f32 %v57_v6, %v12_v5 }
   0x5   :  { %v18_v9 = vmul.f32 1.442695, %v16_v7  ;;  %v20_v10 = vmul.f32 1.442695, %v17_v8 }
   0x6   :  { %44 = vperm.xlu0 %62, %v58_v2  }
   0x7   :  { %63 = vpow2.f32 %v18_v9 }
   0x8   :  { %65 = vpow2.f32 %v20_v10 }
  0x11   :  { %v64_v11 = vpop.eup %63 }
  0x12   :  { %v66_v12 = vpop.eup %65  ;;  %v22_v13 = vadd.f32 1.0, %v64_v11 }
  0x13   :  { %v23_v14 = vadd.f32 1.0, %v66_v12 }
  0x14   :  { %67 = vrcp.f32 %v22_v13 }
  0x15   :  { %69 = vrcp.f32 %v23_v14 }
  0x1e   :  { %v68_v15 = vpop.eup %67 }
  0x1f   :  { %v70_v16 = vpop.eup %69  ;;  %v28_v20 = vsub.f32 1.0, %v68_v15 }
  0x20   :  { %v29_v21 = vsub.f32 1.0, %v70_v16 }
  0x81   :  { %v34_v17 = vpop.permute.xlu0 %33 }
  0x82   :  { %v36_v18 = vmul.f32 %v68_v15, %v34_v17  ;;  %v37_v19 = vmul.f32 %v70_v16, %v34_v17 }
  0x84   :  { %38 = vst [vmem:[%s119_s2] sm:$0x3f] %v36_v18  ;;  %39 = vst [vmem:[%s119_s2 + $0x8] sm:$0x3f] %v37_v19 }
  0x85   :  { %v45_v22 = vpop.permute.xlu0 %44 }
  0x86   :  { %v47_v23 = vmul.f32 %v45_v22, %v28_v20  ;;  %v48_v24 = vmul.f32 %v45_v22, %v29_v21 }
  0x88   :  { %59 = vst [vmem:[%s119_s2 + $0x10] sm:$0x3f] %v47_v23  ;;  %60 = vst [vmem:[%s119_s2 + $0x18] sm:$0x3f] %v48_v24 }

</bundles_post_ra>
